<compile_context>
chip_gen: v6e
topology: v6e:2x2x1
jax: 0.10.0
libtpu: 0.0.40
codegen_flags: <defaults>
</compile_context>

<pallas_src>
import jax
import jax.numpy as jnp
from jax import lax
from jax.experimental import pallas as pl
from jax.experimental.pallas import tpu as pltpu


def _critic_vib_kernel(state_ref, action_ref, noise_ref,
                       w1s_ref, w1a_ref, w2_ref, w1q_ref, consts_ref,
                       out_ref):
    """One batch tile of the fused CriticVIB forward.

    Output slab layout (lane-dense, width OW = out_ref.shape[-1] >= 2H + 1):
      lanes [0, H)   -> mu
      lanes [H, 2H)  -> std = exp(logstd)
      lane  2H       -> q
      other lanes    -> 0
    """
    hid = noise_ref.shape[-1]
    h2 = 2 * hid

    # Packed f32 constants slab (rows: b1 | b2 | b1q | w2q-row | b2q), zero-padded.
    b1 = consts_ref[0:1, :]          # (1, OW)
    b2 = consts_ref[1:2, :]          # (1, OW)
    b1q = consts_ref[2:3, :]         # (1, OW)
    w2q = consts_ref[3:4, :]         # (1, OW)
    b2q = consts_ref[4:5, 0:1]       # (1, 1)

    # ---- fused layer 1 of mu|logstd: state-dot + action-dot accumulate
    #      (the state/action concat is never materialized).  Weight columns
    #      beyond 2H are zero, so h1's padding lanes are exactly 0 after ReLU.
    h1 = (jnp.dot(state_ref[...], w1s_ref[...],
                  preferred_element_type=jnp.float32)
          + jnp.dot(action_ref[...], w1a_ref[...],
                    preferred_element_type=jnp.float32)
          + b1)
    h1 = jnp.maximum(h1, 0.0)                                   # (TB, OW)

    # ---- fused layer 2 via a block-diagonal weight padded to OW output lanes:
    #      out2 = [mu | logstd | 0...]  (already lane-dense, one MXU pass).
    out2 = (jnp.dot(h1.astype(w2_ref.dtype), w2_ref[...],
                    preferred_element_type=jnp.float32)
            + b2)                                               # (TB, OW)

    lane = lax.broadcasted_iota(jnp.int32, out2.shape, dimension=1)
    in_mu = lane < hid
    in_std = jnp.logical_and(lane >= hid, lane < h2)
    # exp only where it matters (argument forced to 0 elsewhere -> finite, discarded).
    ex = jnp.exp(jnp.where(in_std, out2, 0.0))
    mustd = jnp.where(in_mu, out2, jnp.where(in_std, ex, 0.0))  # [mu | std | 0]

    # ---- reparameterization phi = mu + std * eps  (f32 elementwise tail).
    mu = out2[:, :hid]
    std = ex[:, hid:h2]
    phi = mu + std * noise_ref[...]                             # (TB, H)

    # ---- q head: Linear -> ReLU, then the (H, 1) projection as a VPU multiply
    #      + lane reduction (XLU) instead of a 1-column MXU matmul.
    hq = (jnp.dot(phi.astype(w1q_ref.dtype), w1q_ref[...],
                  preferred_element_type=jnp.float32)
          + b1q)
    hq = jnp.maximum(hq, 0.0)                                   # (TB, OW), pad lanes 0
    q = jnp.sum(hq * w2q, axis=-1, keepdims=True) + b2q         # (TB, 1)

    # ---- single lane-dense, full-width store: [mu | std | q | 0].
    out_ref[...] = jnp.where(lane == h2, q, mustd)


def pack_params(params, state_dim, compute_dtype=jnp.float32):
    """Pack the six PyTorch-style Linear layers into fused kernel operands.

    Weights are stored (in, out) and padded to the lane-dense output width OW.
    Matmul operands take `compute_dtype` (bf16 is safe and recommended on
    v5e, v6e and v7x: the MXU accumulates in f32); the small constants slab
    (biases + q projection row) stays f32 since it feeds the VPU/EUP tail.
    """
    hid = params["w2m"].shape[1]
    h2 = 2 * hid
    in_dim = params["w1m"].shape[0]
    ow = max(128, ((h2 + 1 + 127) // 128) * 128)    # lane-dense output width

    w1 = jnp.zeros((in_dim, ow), jnp.float32)
    w1 = w1.at[:, :hid].set(params["w1m"]).at[:, hid:h2].set(params["w1s"])

    w2 = jnp.zeros((ow, ow), jnp.float32)
    w2 = w2.at[:hid, :hid].set(params["w2m"]).at[hid:h2, hid:h2].set(params["w2s"])

    w1q = jnp.zeros((hid, ow), jnp.float32)
    w1q = w1q.at[:, :hid].set(params["w1q"])

    consts = jnp.zeros((8, ow), jnp.float32)
    consts = consts.at[0, :hid].set(params["b1m"][0]).at[0, hid:h2].set(params["b1s"][0])
    consts = consts.at[1, :hid].set(params["b2m"][0]).at[1, hid:h2].set(params["b2s"][0])
    consts = consts.at[2, :hid].set(params["b1q"][0])
    consts = consts.at[3, :hid].set(params["w2q"][:, 0])
    consts = consts.at[4, 0].set(params["b2q"][0, 0])

    return {
        "w1_state": w1[:state_dim].astype(compute_dtype),   # (S, OW)
        "w1_action": w1[state_dim:].astype(compute_dtype),  # (A, OW)
        "w2": w2.astype(compute_dtype),                      # (OW, OW) block-diag
        "w1q": w1q.astype(compute_dtype),                    # (H, OW)
        "consts": consts,                                    # (8, OW) f32
        "hidden_dims": hid,
        "out_width": ow,
    }


def _num_tiles_hint(batch):
    """Use 2 parallel batch tiles on 2-TensorCore chips (v7x) for large batches."""
    try:
        two_tc = "v7" in jax.devices()[0].device_kind.lower()
    except Exception:
        two_tc = False
    return 2 if (two_tc and batch >= 512) else 1


def critic_vib_forward(state, action, packed, noise, *, block_b=2048):
    """state: (B, S), action: (B, A), noise: (B, H) f32.  Returns (q, mu, std).

    The matmul operand dtype is taken from the packed weights.  The kernel is
    overhead/store-bound, so the batch tile is made as large as possible
    (weights ~100 KB + activations stay far below VMEM limits even at tb=2048).
    """
    B, _ = state.shape
    hid = packed["hidden_dims"]
    ow = packed["out_width"]
    compute_dtype = packed["w1_state"].dtype

    # Batch tile: one grid step unless the batch is huge or we can shard across
    # two TensorCores.  bf16 tiles as (16, 128) -> round rows to 16; f32 -> 8.
    mult = 16 if compute_dtype == jnp.bfloat16 else 8
    tb = min(block_b, pl.cdiv(B, _num_tiles_hint(B)))
    tb = max(mult, ((tb + mult - 1) // mult) * mult)
    bp = pl.cdiv(B, tb) * tb
    if bp != B:
        pad = bp - B
        state = jnp.pad(state, ((0, pad), (0, 0)))
        action = jnp.pad(action, ((0, pad), (0, 0)))
        noise = jnp.pad(noise, ((0, pad), (0, 0)))

    state = state.astype(compute_dtype)
    action = action.astype(compute_dtype)
    noise = noise.astype(jnp.float32)   # elementwise reparameterization tail stays f32

    def rows(feat):
        # batch-tiled activation / output slab
        return pl.BlockSpec((tb, feat), lambda i: (i, 0))

    def resident(arr):
        # full array, constant block index -> stays resident in VMEM across steps
        return pl.BlockSpec(arr.shape, lambda i: (0, 0))

    in_specs = [
        rows(state.shape[1]), rows(action.shape[1]), rows(hid),
        resident(packed["w1_state"]), resident(packed["w1_action"]),
        resident(packed["w2"]), resident(packed["w1q"]),
        resident(packed["consts"]),
    ]

    slab = pl.pallas_call(
        _critic_vib_kernel,
        grid=(bp // tb,),
        in_specs=in_specs,
        out_specs=rows(ow),
        out_shape=jax.ShapeDtypeStruct((bp, ow), jnp.float32),
        compiler_params=pltpu.CompilerParams(
            dimension_semantics=("parallel",)),
    )(state, action, noise,
      packed["w1_state"], packed["w1_action"], packed["w2"], packed["w1q"],
      packed["consts"])

    q = slab[:B, 2 * hid:2 * hid + 1]
    mu = slab[:B, :hid]
    std = slab[:B, hid:2 * hid]
    return q, mu, std


def init_params(key, state_dim, action_dim, hidden_dims):
    """Deterministic synthetic parameters (PyTorch-Linear init, stored as (in, out))."""
    in_dim = state_dim + action_dim
    ks = jax.random.split(key, 12)

    def lin(kw, kb, fan_in, fan_out):
        bound = 1.0 / jnp.sqrt(fan_in)
        w = jax.random.uniform(kw, (fan_in, fan_out), jnp.float32, -bound, bound)
        b = jax.random.uniform(kb, (1, fan_out), jnp.float32, -bound, bound)
        return w, b

    p = {}
    p["w1m"], p["b1m"] = lin(ks[0], ks[1], in_dim, hidden_dims)
    p["w2m"], p["b2m"] = lin(ks[2], ks[3], hidden_dims, hidden_dims)
    p["w1s"], p["b1s"] = lin(ks[4], ks[5], in_dim, hidden_dims)
    p["w2s"], p["b2s"] = lin(ks[6], ks[7], hidden_dims, hidden_dims)
    p["w1q"], p["b1q"] = lin(ks[8], ks[9], hidden_dims, hidden_dims)
    p["w2q"], p["b2q"] = lin(ks[10], ks[11], hidden_dims, 1)
    return p


if __name__ == "__main__":
    key = jax.random.PRNGKey(0)
    k_state, k_action, k_noise, k_params = jax.random.split(key, 4)

    batch, state_dim, action_dim, hidden_dims = 128, 11, 3, 32

    state = jax.random.normal(k_state, (batch, state_dim), jnp.float32)
    action = jax.random.normal(k_action, (batch, action_dim), jnp.float32)
    # torch.randn_like(std) equivalent, drawn outside the kernel so the pure-JAX
    # reference uses identical noise.
    # TODO(synk): optionally draw the noise in-kernel with pltpu.prng_seed +
    # pltpu.stateful_normal to drop this input stream when bit-parity isn't needed.
    noise = jax.random.normal(k_noise, (batch, hidden_dims), jnp.float32)

    params = init_params(k_params, state_dim, action_dim, hidden_dims)

    # Pure-JAX reference of the original (unfused) math.
    sa = jnp.concatenate([state, action], axis=1)
    h_mu = jnp.maximum(sa @ params["w1m"] + params["b1m"], 0.0)
    mu_ref = h_mu @ params["w2m"] + params["b2m"]
    h_ls = jnp.maximum(sa @ params["w1s"] + params["b1s"], 0.0)
    std_ref = jnp.exp(h_ls @ params["w2s"] + params["b2s"])
    phi = mu_ref + std_ref * noise
    h_q = jnp.maximum(phi @ params["w1q"] + params["b1q"], 0.0)
    q_ref = h_q @ params["w2q"] + params["b2q"]

    # f32 operands, default (single grid step) tiling: tight correctness check.
    packed_f32 = pack_params(params, state_dim, compute_dtype=jnp.float32)
    q, mu, std = critic_vib_forward(state, action, packed_f32, noise)
    jax.block_until_ready((q, mu, std))
    assert q.shape == (batch, 1)
    assert mu.shape == (batch, hidden_dims)
    assert std.shape == (batch, hidden_dims)
    assert jnp.allclose(mu, mu_ref, atol=1e-4, rtol=1e-4)
    assert jnp.allclose(std, std_ref, atol=1e-4, rtol=1e-4)
    assert jnp.allclose(q, q_ref, atol=1e-4, rtol=1e-4)

    # Multi-tile + padded-batch correctness check (exercises grid pipelining).
    q2, mu2, std2 = critic_vib_forward(state[:100], action[:100], packed_f32,
                                       noise[:100], block_b=48)
    jax.block_until_ready((q2, mu2, std2))
    assert jnp.allclose(q2, q_ref[:100], atol=1e-4, rtol=1e-4)
    assert jnp.allclose(mu2, mu_ref[:100], atol=1e-4, rtol=1e-4)
    assert jnp.allclose(std2, std_ref[:100], atol=1e-4, rtol=1e-4)

    # bf16 matmul operands (recommended on v5e/v6e/v7x): f32 accumulation and a
    # f32 elementwise tail; loose check against the f32 reference.
    packed_bf16 = pack_params(params, state_dim, compute_dtype=jnp.bfloat16)
    q16, mu16, std16 = critic_vib_forward(state, action, packed_bf16, noise)
    jax.block_until_ready((q16, mu16, std16))
    assert jnp.allclose(mu16, mu_ref, atol=2e-1, rtol=2e-1)
    assert jnp.allclose(std16, std_ref, atol=2e-1, rtol=2e-1)
    assert jnp.allclose(q16, q_ref, atol=2e-1, rtol=2e-1)

    print("KERNEL_OK")
</pallas_src>

<mosaic_0001>
module attributes {stable_mosaic.version = 11 : i64} {
  func.func @_critic_vib_kernel(%arg0: i32, %arg1: memref<128x11xf32, #tpu.memory_space<vmem>>, %arg2: memref<128x3xf32, #tpu.memory_space<vmem>>, %arg3: memref<128x32xf32, #tpu.memory_space<vmem>>, %arg4: memref<11x128xf32, #tpu.memory_space<vmem>>, %arg5: memref<3x128xf32, #tpu.memory_space<vmem>>, %arg6: memref<128x128xf32, #tpu.memory_space<vmem>>, %arg7: memref<32x128xf32, #tpu.memory_space<vmem>>, %arg8: memref<8x128xf32, #tpu.memory_space<vmem>>, %arg9: memref<128x128xf32, #tpu.memory_space<vmem>>) attributes {dimension_semantics = [#tpu.dimension_semantics<parallel>], iteration_bounds = array<i64: 1>, scalar_prefetch = 0 : i64, scratch_operands = 0 : i64, tpu.core_type = #tpu.core_type<tc>, window_params = [{transform_indices = @transform_0, window_bounds = array<i64: 128, 11>}, {transform_indices = @transform_1, window_bounds = array<i64: 128, 3>}, {transform_indices = @transform_2, window_bounds = array<i64: 128, 32>}, {pipeline_mode = #tpu.pipeline_mode<synchronous>, transform_indices = @transform_3, window_bounds = array<i64: 11, 128>}, {pipeline_mode = #tpu.pipeline_mode<synchronous>, transform_indices = @transform_4, window_bounds = array<i64: 3, 128>}, {pipeline_mode = #tpu.pipeline_mode<synchronous>, transform_indices = @transform_5, window_bounds = array<i64: 128, 128>}, {pipeline_mode = #tpu.pipeline_mode<synchronous>, transform_indices = @transform_6, window_bounds = array<i64: 32, 128>}, {pipeline_mode = #tpu.pipeline_mode<synchronous>, transform_indices = @transform_7, window_bounds = array<i64: 8, 128>}, {transform_indices = @transform_8, window_bounds = array<i64: 128, 128>}]} {
    %c0 = arith.constant 0 : index
    %c0_0 = arith.constant 0 : index
    %0 = vector.load %arg8[%c0, %c0_0] : memref<8x128xf32, #tpu.memory_space<vmem>>, vector<1x128xf32>
    %c1 = arith.constant 1 : index
    %c0_1 = arith.constant 0 : index
    %1 = vector.load %arg8[%c1, %c0_1] : memref<8x128xf32, #tpu.memory_space<vmem>>, vector<1x128xf32>
    %c2 = arith.constant 2 : index
    %c0_2 = arith.constant 0 : index
    %2 = vector.load %arg8[%c2, %c0_2] : memref<8x128xf32, #tpu.memory_space<vmem>>, vector<1x128xf32>
    %c3 = arith.constant 3 : index
    %c0_3 = arith.constant 0 : index
    %3 = vector.load %arg8[%c3, %c0_3] : memref<8x128xf32, #tpu.memory_space<vmem>>, vector<1x128xf32>
    %c4 = arith.constant 4 : index
    %c0_4 = arith.constant 0 : index
    %4 = vector.load %arg8[%c4, %c0_4] : memref<8x128xf32, #tpu.memory_space<vmem>>, vector<1x1xf32>
    %c0_5 = arith.constant 0 : index
    %c0_6 = arith.constant 0 : index
    %5 = vector.load %arg1[%c0_5, %c0_6] : memref<128x11xf32, #tpu.memory_space<vmem>>, vector<128x11xf32>
    %c0_7 = arith.constant 0 : index
    %c0_8 = arith.constant 0 : index
    %6 = vector.load %arg4[%c0_7, %c0_8] : memref<11x128xf32, #tpu.memory_space<vmem>>, vector<11x128xf32>
    %cst = arith.constant dense<0.000000e+00> : vector<128x128xf32>
    %7 = tpu.matmul %5, %6, %cst {dimension_numbers = #tpu.dot_dimension_numbers<[1], [0], [0], [1], [0, 0, 1, 1], [], []>} : vector<128x11xf32>, vector<11x128xf32>, vector<128x128xf32> -> vector<128x128xf32>
    %c0_9 = arith.constant 0 : index
    %c0_10 = arith.constant 0 : index
    %8 = vector.load %arg2[%c0_9, %c0_10] : memref<128x3xf32, #tpu.memory_space<vmem>>, vector<128x3xf32>
    %c0_11 = arith.constant 0 : index
    %c0_12 = arith.constant 0 : index
    %9 = vector.load %arg5[%c0_11, %c0_12] : memref<3x128xf32, #tpu.memory_space<vmem>>, vector<3x128xf32>
    %cst_13 = arith.constant dense<0.000000e+00> : vector<128x128xf32>
    %10 = tpu.matmul %8, %9, %cst_13 {dimension_numbers = #tpu.dot_dimension_numbers<[1], [0], [0], [1], [0, 0, 1, 1], [], []>} : vector<128x3xf32>, vector<3x128xf32>, vector<128x128xf32> -> vector<128x128xf32>
    %11 = arith.addf %7, %10 : vector<128x128xf32>
    %12 = vector.broadcast %0 : vector<1x128xf32> to vector<128x128xf32>
    %13 = arith.addf %11, %12 : vector<128x128xf32>
    %cst_14 = arith.constant 0.000000e+00 : f32
    %14 = vector.broadcast %cst_14 : f32 to vector<128x128xf32>
    %15 = arith.maximumf %13, %14 : vector<128x128xf32>
    %c0_15 = arith.constant 0 : index
    %c0_16 = arith.constant 0 : index
    %16 = vector.load %arg6[%c0_15, %c0_16] : memref<128x128xf32, #tpu.memory_space<vmem>>, vector<128x128xf32>
    %cst_17 = arith.constant dense<0.000000e+00> : vector<128x128xf32>
    %17 = tpu.matmul %15, %16, %cst_17 {dimension_numbers = #tpu.dot_dimension_numbers<[1], [0], [0], [1], [0, 0, 1, 1], [], []>} : vector<128x128xf32>, vector<128x128xf32>, vector<128x128xf32> -> vector<128x128xf32>
    %18 = vector.broadcast %1 : vector<1x128xf32> to vector<128x128xf32>
    %19 = arith.addf %17, %18 : vector<128x128xf32>
    %20 = tpu.iota {dimensions = array<i32: 1>} : vector<128x128xi32>
    %c32_i32 = arith.constant 32 : i32
    %21 = vector.broadcast %c32_i32 : i32 to vector<128x128xi32>
    %22 = arith.cmpi slt, %20, %21 : vector<128x128xi32>
    %c32_i32_18 = arith.constant 32 : i32
    %23 = vector.broadcast %c32_i32_18 : i32 to vector<128x128xi32>
    %24 = arith.cmpi sge, %20, %23 : vector<128x128xi32>
    %c64_i32 = arith.constant 64 : i32
    %25 = vector.broadcast %c64_i32 : i32 to vector<128x128xi32>
    %26 = arith.cmpi slt, %20, %25 : vector<128x128xi32>
    %27 = arith.andi %24, %26 : vector<128x128xi1>
    %cst_19 = arith.constant 0.000000e+00 : f32
    %28 = vector.broadcast %cst_19 : f32 to vector<128x128xf32>
    %29 = arith.select %27, %19, %28 : vector<128x128xi1>, vector<128x128xf32>
    %30 = math.exp %29 : vector<128x128xf32>
    %cst_20 = arith.constant 0.000000e+00 : f32
    %31 = vector.broadcast %cst_20 : f32 to vector<128x128xf32>
    %32 = arith.select %27, %30, %31 : vector<128x128xi1>, vector<128x128xf32>
    %33 = arith.select %22, %19, %32 : vector<128x128xi1>, vector<128x128xf32>
    %34 = vector.extract_strided_slice %19 {offsets = [0, 0], sizes = [128, 32], strides = [1, 1]} : vector<128x128xf32> to vector<128x32xf32>
    %35 = vector.extract_strided_slice %30 {offsets = [0, 32], sizes = [128, 32], strides = [1, 1]} : vector<128x128xf32> to vector<128x32xf32>
    %c0_21 = arith.constant 0 : index
    %c0_22 = arith.constant 0 : index
    %36 = vector.load %arg3[%c0_21, %c0_22] : memref<128x32xf32, #tpu.memory_space<vmem>>, vector<128x32xf32>
    %37 = arith.mulf %35, %36 : vector<128x32xf32>
    %38 = arith.addf %34, %37 : vector<128x32xf32>
    %c0_23 = arith.constant 0 : index
    %c0_24 = arith.constant 0 : index
    %39 = vector.load %arg7[%c0_23, %c0_24] : memref<32x128xf32, #tpu.memory_space<vmem>>, vector<32x128xf32>
    %cst_25 = arith.constant dense<0.000000e+00> : vector<128x128xf32>
    %40 = tpu.matmul %38, %39, %cst_25 {dimension_numbers = #tpu.dot_dimension_numbers<[1], [0], [0], [1], [0, 0, 1, 1], [], []>} : vector<128x32xf32>, vector<32x128xf32>, vector<128x128xf32> -> vector<128x128xf32>
    %41 = vector.broadcast %2 : vector<1x128xf32> to vector<128x128xf32>
    %42 = arith.addf %40, %41 : vector<128x128xf32>
    %cst_26 = arith.constant 0.000000e+00 : f32
    %43 = vector.broadcast %cst_26 : f32 to vector<128x128xf32>
    %44 = arith.maximumf %42, %43 : vector<128x128xf32>
    %45 = vector.broadcast %3 : vector<1x128xf32> to vector<128x128xf32>
    %46 = arith.mulf %44, %45 : vector<128x128xf32>
    %cst_27 = arith.constant dense<0.000000e+00> : vector<128xf32>
    %47 = vector.multi_reduction <add>, %46, %cst_27 [1] : vector<128x128xf32> to vector<128xf32>
    %48 = vector.shape_cast %47 : vector<128xf32> to vector<128x1xf32>
    %49 = vector.broadcast %4 : vector<1x1xf32> to vector<128x1xf32>
    %50 = arith.addf %48, %49 : vector<128x1xf32>
    %c64_i32_28 = arith.constant 64 : i32
    %51 = vector.broadcast %c64_i32_28 : i32 to vector<128x128xi32>
    %52 = arith.cmpi eq, %20, %51 : vector<128x128xi32>
    %53 = vector.shape_cast %50 : vector<128x1xf32> to vector<128x1xf32>
    %54 = vector.broadcast %53 : vector<128x1xf32> to vector<128x128xf32>
    %55 = arith.select %52, %54, %33 : vector<128x128xi1>, vector<128x128xf32>
    %c0_29 = arith.constant 0 : index
    %c0_30 = arith.constant 0 : index
    %56 = vector.load %arg9[%c0_29, %c0_30] : memref<128x128xf32, #tpu.memory_space<vmem>>, vector<128x128xf32>
    tpu.vector_store %arg9[%c0_29, %c0_30], %55 {strides = array<i32>} : memref<128x128xf32, #tpu.memory_space<vmem>>, vector<128x128xf32>,
    return
  }
  func.func @transform_0(%arg0: i32) -> (i32, i32) {
    %c0_i32 = arith.constant 0 : i32
    %c0_i32_0 = arith.constant 0 : i32
    return %arg0, %c0_i32 : i32, i32
  }
  func.func @transform_1(%arg0: i32) -> (i32, i32) {
    %c0_i32 = arith.constant 0 : i32
    %c0_i32_0 = arith.constant 0 : i32
    return %arg0, %c0_i32 : i32, i32
  }
  func.func @transform_2(%arg0: i32) -> (i32, i32) {
    %c0_i32 = arith.constant 0 : i32
    %c0_i32_0 = arith.constant 0 : i32
    return %arg0, %c0_i32 : i32, i32
  }
  func.func @transform_3(%arg0: i32) -> (i32, i32) {
    %c0_i32 = arith.constant 0 : i32
    %c0_i32_0 = arith.constant 0 : i32
    %c0_i32_1 = arith.constant 0 : i32
    return %c0_i32, %c0_i32_0 : i32, i32
  }
  func.func @transform_4(%arg0: i32) -> (i32, i32) {
    %c0_i32 = arith.constant 0 : i32
    %c0_i32_0 = arith.constant 0 : i32
    %c0_i32_1 = arith.constant 0 : i32
    return %c0_i32, %c0_i32_0 : i32, i32
  }
  func.func @transform_5(%arg0: i32) -> (i32, i32) {
    %c0_i32 = arith.constant 0 : i32
    %c0_i32_0 = arith.constant 0 : i32
    %c0_i32_1 = arith.constant 0 : i32
    return %c0_i32, %c0_i32_0 : i32, i32
  }
  func.func @transform_6(%arg0: i32) -> (i32, i32) {
    %c0_i32 = arith.constant 0 : i32
    %c0_i32_0 = arith.constant 0 : i32
    %c0_i32_1 = arith.constant 0 : i32
    return %c0_i32, %c0_i32_0 : i32, i32
  }
  func.func @transform_7(%arg0: i32) -> (i32, i32) {
    %c0_i32 = arith.constant 0 : i32
    %c0_i32_0 = arith.constant 0 : i32
    %c0_i32_1 = arith.constant 0 : i32
    return %c0_i32, %c0_i32_0 : i32, i32
  }
  func.func @transform_8(%arg0: i32) -> (i32, i32) {
    %c0_i32 = arith.constant 0 : i32
    %c0_i32_0 = arith.constant 0 : i32
    return %arg0, %c0_i32 : i32, i32
  }
}

</mosaic_0001>

<bundles_post_ra>
// kernel: tpu_custom_call.1
= control target key start
LH: loop header
LB: loop body
LE: loop exit
PB: predicated region body
PF: predicated region fallthrough
CT: control target
= control target key end

     0   :  { %vm119_vm0 = vcmask 1042432   ;;  %vm70_vm1 = vcmask 23552   ;;  %vm268_vm2 = vcmask 89088   ;;  %s2460_s0 = inlined_call_operand.vmem [shape: f32[128,11], index: 0, kind: input, shape index: {}]   ;;  %s2461_s1 = inlined_call_operand.vmem [shape: f32[128,3], index: 1, kind: input, shape index: {}]   ;;  %s2462_s2 = inlined_call_operand.vmem [shape: f32[128,32], index: 2, kind: input, shape index: {}]   ;;  %s2463_s3 = inlined_call_operand.vmem [shape: f32[11,128], index: 3, kind: input, shape index: {}]   ;;  %s2464_s4 = inlined_call_operand.vmem [shape: f32[3,128], index: 4, kind: input, shape index: {}]   ;;  %s2465_s5 = inlined_call_operand.vmem [shape: f32[128,128], index: 5, kind: input, shape index: {}]   ;;  %s2466_s6 = inlined_call_operand.vmem [shape: f32[32,128], index: 6, kind: input, shape index: {}]   ;;  %s2467_s7 = inlined_call_operand.vmem [shape: f32[8,128], index: 7, kind: input, shape index: {}]   ;;  %s2468_s8 = inlined_call_operand.hbm [shape: f32[128,128], index: 8, kind: output, shape index: {}]  }
   0x1   :  { %v69_v0 = vld [vmem:[%s2464_s4] sm:$0x7]  ;;  %v52_v1 = vld [vmem:[%s2463_s3 + $0x8] sm:$0x7]  ;;  %v55_v6 = vld [vmem:[%s2461_s1 + $0x10] sm:$0xff] }
   0x2   :  { %v53_v2 = vld [vmem:[%s2461_s1] sm:$0xff]  ;;  %1489 = vmatprep.subr.msk.mxu0 %vm119_vm0, %v69_v0  ;;  %1515 = vmatprep.subr.msk.mxu1 %vm119_vm0, %v52_v1  ;;  %v54_v3 = vld [vmem:[%s2461_s1 + $0x8] sm:$0xff]  ;;  %v37_v8 = vld [vmem:[%s2460_s0 + $0x10] sm:$0xff] }
   0x3   :  { %v51_v4 = vld [vmem:[%s2463_s3] sm:$0xff]  ;;  %1490 = vmatpush3.msk.msra.mxu0 %vm119_vm0, %v69_v0  ;;  %1491 = vmatprep.mubr.msk.f32.mxu0 %vm70_vm1, %v53_v2  ;;  %v36_v7 = vld [vmem:[%s2460_s0 + $0x8] sm:$0xff]  ;;  %v56_v9 = vld [vmem:[%s2461_s1 + $0x18] sm:$0xff] }
   0x4   :  { %v35_v5 = vld [vmem:[%s2460_s0] sm:$0xff]  ;;  %1516 = vmatpush3.msk.msra.mxu1 %vm119_vm0, %v52_v1  ;;  %1492 = vmatmul.mubr.msk.f32.vlgmr.msra.gmra.mxu0 %vm70_vm1, %v54_v3  ;;  %v38_v11 = vld [vmem:[%s2460_s0 + $0x18] sm:$0xff]  ;;  %v58_v13 = vld [vmem:[%s2461_s1 + $0x28] sm:$0xff] }
   0x5   :  { %1517 = vmatprep.subr.mxu1 %v51_v4  ;;  %1519 = vmatprep.mubr.msk.f32.mxu1 %vm268_vm2, %v35_v5  ;;  %v57_v10 = vld [vmem:[%s2461_s1 + $0x20] sm:$0xff]  ;;  %v59_v14 = vld [vmem:[%s2461_s1 + $0x30] sm:$0xff]  ;;  %v40_v15 = vld [vmem:[%s2460_s0 + $0x28] sm:$0xff] }
   0x6   :  { %1518 = vmatpush3.msra.mxu1 %v51_v4  ;;  %1494 = vmatprep.mubr.msk.f32.mxu0 %vm70_vm1, %v55_v6  ;;  %v39_v12 = vld [vmem:[%s2460_s0 + $0x20] sm:$0xff]  ;;  %v516_v16 = vld [vmem:[%s2465_s5 + $0x78] sm:$0xff]  ;;  %v41_v17 = vld [vmem:[%s2460_s0 + $0x30] sm:$0xff] }
   0x7   :  { %1520 = vmatmul.mubr.msk.f32.vlgmr.msra.gmra.mxu1 %vm268_vm2, %v36_v7  ;;  %v60_v18 = vld [vmem:[%s2461_s1 + $0x38] sm:$0xff]  ;;  %1543 = vmatprep.subr.mxu0 %v516_v16  ;;  %v515_v19 = vld [vmem:[%s2465_s5 + $0x70] sm:$0xff]  ;;  %v61_v20 = vld [vmem:[%s2461_s1 + $0x40] sm:$0xff] }
   0x8   :  { %1522 = vmatprep.mubr.msk.f32.mxu1 %vm268_vm2, %v37_v8  ;;  %1495 = vmatmul.mubr.msk.f32.gmra.mxu0 %vm70_vm1, %v56_v9  ;;  %v514_v21 = vld [vmem:[%s2465_s5 + $0x68] sm:$0xff]  ;;  %v42_v22 = vld [vmem:[%s2460_s0 + $0x38] sm:$0xff] }
   0x9   :  { %1497 = vmatprep.mubr.msk.f32.mxu0 %vm70_vm1, %v57_v10  ;;  %1544 = vmatpush3.msra.mxu0 %v516_v16 }
   0xa   :  { %1545 = vmatprep.subr.mxu0 %v515_v19 }
   0xb   :  { %1523 = vmatmul.mubr.msk.f32.gmra.mxu1 %vm268_vm2, %v38_v11 }
   0xc   :  { %1525 = vmatprep.mubr.msk.f32.mxu1 %vm268_vm2, %v39_v12  ;;  %1498 = vmatmul.mubr.msk.f32.gmra.mxu0 %vm70_vm1, %v58_v13 }
   0xd   :  { %1500 = vmatprep.mubr.msk.f32.mxu0 %vm70_vm1, %v59_v14 }
   0xf   :  { %1526 = vmatmul.mubr.msk.f32.gmra.mxu1 %vm268_vm2, %v40_v15 }
  0x10   :  { %1528 = vmatprep.mubr.msk.f32.mxu1 %vm268_vm2, %v41_v17  ;;  %1501 = vmatmul.mubr.msk.f32.gmra.mxu0 %vm70_vm1, %v60_v18 }
  0x11   :  { %13 = vsyncpa [#allocation3], 0  ;;  %1503 = vmatprep.mubr.msk.f32.mxu0 %vm70_vm1, %v61_v20  ;;  %v43_v23 = vld [vmem:[%s2460_s0 + $0x40] sm:$0xff]  ;;  %v62_v24 = vld [vmem:[%s2461_s1 + $0x48] sm:$0xff]  ;;  %1546 = vmatpush3.msra.mxu0 %v515_v19  ;;  %s1693_s13 = smov 32   ;;  %vm936_vm6 = vcmask 261120  }
  0x12   :  { %v63_v25 = vld [vmem:[%s2461_s1 + $0x50] sm:$0xff]  ;;  %1547 = vmatprep.subr.mxu0 %v514_v21  ;;  %v513_v26 = vld [vmem:[%s2465_s5 + $0x60] sm:$0xff]  ;;  %v44_v27 = vld [vmem:[%s2460_s0 + $0x48] sm:$0xff] }
  0x13   :  { %1529 = vmatmul.mubr.msk.f32.gmra.mxu1 %vm268_vm2, %v42_v22  ;;  %1548 = vmatpush3.msra.mxu0 %v514_v21  ;;  %v512_v28 = vld [vmem:[%s2465_s5 + $0x58] sm:$0xff]  ;;  %v45_v29 = vld [vmem:[%s2460_s0 + $0x50] sm:$0xff]  ;;  %v65_v31 = vld [vmem:[%s2461_s1 + $0x60] sm:$0xff] }
  0x14   :  { %1531 = vmatprep.mubr.msk.f32.mxu1 %vm268_vm2, %v43_v23  ;;  %1504 = vmatmul.mubr.msk.f32.gmra.mxu0 %vm70_vm1, %v62_v24  ;;  %v64_v30 = vld [vmem:[%s2461_s1 + $0x58] sm:$0xff]  ;;  %v511_v32 = vld [vmem:[%s2465_s5 + $0x50] sm:$0xff]  ;;  %v47_v34 = vld [vmem:[%s2460_s0 + $0x60] sm:$0xff] }
  0x15   :  { %1506 = vmatprep.mubr.msk.f32.mxu0 %vm70_vm1, %v63_v25  ;;  %1549 = vmatprep.subr.mxu0 %v513_v26  ;;  %v46_v33 = vld [vmem:[%s2460_s0 + $0x58] sm:$0xff]  ;;  %v66_v35 = vld [vmem:[%s2461_s1 + $0x68] sm:$0xff]  ;;  %v67_v36 = vld [vmem:[%s2461_s1 + $0x70] sm:$0xff] }
  0x16   :  { %1550 = vmatpush3.msra.mxu0 %v513_v26  ;;  %v510_v37 = vld [vmem:[%s2465_s5 + $0x48] sm:$0xff]  ;;  %v509_v39 = vld [vmem:[%s2465_s5 + $0x40] sm:$0xff]  ;;  %v49_v40 = vld [vmem:[%s2460_s0 + $0x70] sm:$0xff] }
  0x17   :  { %1532 = vmatmul.mubr.msk.f32.gmra.mxu1 %vm268_vm2, %v44_v27  ;;  %1551 = vmatprep.subr.mxu0 %v512_v28  ;;  %v48_v38 = vld [vmem:[%s2460_s0 + $0x68] sm:$0xff]  ;;  %v68_v41 = vld [vmem:[%s2461_s1 + $0x78] sm:$0xff]  ;;  %v507_v44 = vld [vmem:[%s2465_s5 + $0x30] sm:$0xff] }
  0x18   :  { %1534 = vmatprep.mubr.msk.f32.mxu1 %vm268_vm2, %v45_v29  ;;  %1507 = vmatmul.mubr.msk.f32.gmra.mxu0 %vm70_vm1, %v64_v30  ;;  %v508_v42 = vld [vmem:[%s2465_s5 + $0x38] sm:$0xff]  ;;  %v506_v45 = vld [vmem:[%s2465_s5 + $0x28] sm:$0xff]  ;;  %v505_v46 = vld [vmem:[%s2465_s5 + $0x20] sm:$0xff] }
  0x19   :  { %1509 = vmatprep.mubr.msk.f32.mxu0 %vm70_vm1, %v65_v31  ;;  %1552 = vmatpush3.msra.mxu0 %v512_v28  ;;  %v50_v43 = vld [vmem:[%s2460_s0 + $0x78] sm:$0xff]  ;;  %v503_v48 = vld [vmem:[%s2465_s5 + $0x10] sm:$0xff]  ;;  %v502_v49 = vld [vmem:[%s2465_s5 + $0x8] sm:$0xff] }
  0x1a   :  { %1553 = vmatprep.subr.mxu0 %v511_v32  ;;  %v504_v47 = vld [vmem:[%s2465_s5 + $0x18] sm:$0xff]  ;;  %v501_v50 = vld [vmem:[%s2465_s5] sm:$0xff]  ;;  %v754_v52 = vld [vmem:[%s2462_s2 + $0x10] sm:$0xff] }
  0x1b   :  { %1535 = vmatmul.mubr.msk.f32.gmra.mxu1 %vm268_vm2, %v46_v33  ;;  %1554 = vmatpush3.msra.mxu0 %v511_v32  ;;  %v752_v51 = vld [vmem:[%s2462_s2] sm:$0xff]  ;;  %v753_v53 = vld [vmem:[%s2462_s2 + $0x8] sm:$0xff]  ;;  %v755_v54 = vld [vmem:[%s2462_s2 + $0x18] sm:$0xff] }
  0x1c   :  { %1537 = vmatprep.mubr.msk.f32.mxu1 %vm268_vm2, %v47_v34  ;;  %1510 = vmatmul.mubr.msk.f32.gmra.mxu0 %vm70_vm1, %v66_v35  ;;  %v757_v55 = vld [vmem:[%s2462_s2 + $0x28] sm:$0xff]  ;;  %v756_v56 = vld [vmem:[%s2462_s2 + $0x20] sm:$0xff]  ;;  %v759_v57 = vld [vmem:[%s2462_s2 + $0x38] sm:$0xff] }
  0x1d   :  { %1512 = vmatprep.mubr.msk.f32.mxu0 %vm70_vm1, %v67_v36  ;;  %1555 = vmatprep.subr.mxu0 %v510_v37  ;;  %v758_v58 = vld [vmem:[%s2462_s2 + $0x30] sm:$0xff]  ;;  %v761_v59 = vld [vmem:[%s2462_s2 + $0x48] sm:$0xff]  ;;  %v760_v60 = vld [vmem:[%s2462_s2 + $0x40] sm:$0xff] }
  0x1e   :  { %1556 = vmatpush3.msra.mxu0 %v510_v37  ;;  %784 = vrot.lane.b32.xlu0 %v752_v51, %s1693_s13  ;;  %v763_v61 = vld [vmem:[%s2462_s2 + $0x58] sm:$0xff]  ;;  %v762_v62 = vld [vmem:[%s2462_s2 + $0x50] sm:$0xff]  ;;  %v765_v63 = vld [vmem:[%s2462_s2 + $0x68] sm:$0xff] }
  0x1f   :  { %1538 = vmatmul.mubr.msk.f32.gmra.mxu1 %vm268_vm2, %v48_v38  ;;  %1557 = vmatprep.subr.mxu0 %v509_v39  ;;  %v764_v0 = vld [vmem:[%s2462_s2 + $0x60] sm:$0xff]  ;;  %v767_v1 = vld [vmem:[%s2462_s2 + $0x78] sm:$0xff]  ;;  %v766_v2 = vld [vmem:[%s2462_s2 + $0x70] sm:$0xff] }
  0x20   :  { %1540 = vmatprep.mubr.msk.f32.mxu1 %vm268_vm2, %v49_v40  ;;  %1513 = vmatmul.mubr.msk.f32.gmra.mxu0 %vm70_vm1, %v68_v41  ;;  %v1980_v6 = vld [vmem:[%s2467_s7] ss:$0 sm:$0xff] }
  0x21   :  { %1558 = vmatpush3.msra.mxu0 %v509_v39  ;;  %788 = vrot.lane.b32.xlu1 %v754_v52, %s1693_s13 }
  0x22   :  { %1559 = vmatprep.subr.mxu0 %v508_v42  ;;  %786 = vrot.lane.b32.xlu0 %v753_v53, %s1693_s13 }
  0x23   :  { %1541 = vmatmul.mubr.msk.f32.gmra.mxu1 %vm268_vm2, %v50_v43  ;;  %1560 = vmatpush3.msra.mxu0 %v508_v42 }
  0x24   :  { %1561 = vmatprep.subr.mxu0 %v507_v44 }
  0x25   :  { %1562 = vmatpush3.msra.mxu0 %v507_v44  ;;  %790 = vrot.lane.b32.xlu1 %v755_v54, %s1693_s13 }
  0x26   :  { %1563 = vmatprep.subr.mxu0 %v506_v45  ;;  %792 = vrot.lane.b32.xlu0 %v756_v56, %s1693_s13 }
  0x27   :  { %1564 = vmatpush3.msra.mxu0 %v506_v45 }
  0x28   :  { %1565 = vmatprep.subr.mxu0 %v505_v46 }
  0x29   :  { %1566 = vmatpush3.msra.mxu0 %v505_v46  ;;  %794 = vrot.lane.b32.xlu1 %v757_v55, %s1693_s13 }
  0x2a   :  { %1567 = vmatprep.subr.mxu0 %v504_v47  ;;  %796 = vrot.lane.b32.xlu0 %v758_v58, %s1693_s13 }
  0x2b   :  { %1568 = vmatpush3.msra.mxu0 %v504_v47 }
  0x2c   :  { %1569 = vmatprep.subr.mxu0 %v503_v48 }
  0x2d   :  { %1570 = vmatpush3.msra.mxu0 %v503_v48  ;;  %798 = vrot.lane.b32.xlu1 %v759_v57, %s1693_s13 }
  0x2e   :  { %1571 = vmatprep.subr.mxu0 %v502_v49  ;;  %800 = vrot.lane.b32.xlu0 %v760_v60, %s1693_s13 }
  0x2f   :  { %1572 = vmatpush3.msra.mxu0 %v502_v49 }
  0x30   :  { %1573 = vmatprep.subr.mxu0 %v501_v50 }
  0x31   :  { %1574 = vmatpush3.msra.mxu0 %v501_v50  ;;  %802 = vrot.lane.b32.xlu1 %v761_v59, %s1693_s13 }
  0x32   :  { %804 = vrot.lane.b32.xlu0 %v762_v62, %s1693_s13 }
  0x35   :  { %806 = vrot.lane.b32.xlu1 %v763_v61, %s1693_s13 }
  0x36   :  { %808 = vrot.lane.b32.xlu0 %v764_v0, %s1693_s13 }
  0x39   :  { %810 = vrot.lane.b32.xlu1 %v765_v63, %s1693_s13 }
  0x3a   :  { %812 = vrot.lane.b32.xlu0 %v766_v2, %s1693_s13 }
  0x3d   :  { %814 = vrot.lane.b32.xlu1 %v767_v1, %s1693_s13 }
  0xc4   :  { %v1493_v3 = vpop.f32.mrf.mxu0 }
  0xc6   :  { %v189_v4 = vpop.f32.mrf.mxu0 }
  0xc7   :  { %v1521_v5 = vpop.f32.mrf.mxu1 }
  0xc8   :  { %v392_v7 = vadd.f32 %v1521_v5, %v1493_v3  ;;  %v1496_v8 = vpop.f32.mrf.mxu0 }
  0xc9   :  { %v386_v9 = vpop.f32.mrf.mxu1 }
  0xca   :  { %v387_v10 = vadd.f32 %v386_v9, %v189_v4  ;;  %v199_v11 = vpop.f32.mrf.mxu0  ;;  %v470_v12 = vadd.f32 %v1980_v6, %v392_v7 }
  0xcb   :  { %v1524_v13 = vpop.f32.mrf.mxu1 }
  0xcc   :  { %v469_v14 = vadd.f32 %v1980_v6, %v387_v10  ;;  %v402_v15 = vadd.f32 %v1524_v13, %v1496_v8  ;;  %v1499_v16 = vpop.f32.mrf.mxu0  ;;  %v486_v22 = vmax.f32 %v470_v12, 0.0 }
  0xcd   :  { %v396_v17 = vpop.f32.mrf.mxu1 }
  0xce   :  { %v485_v18 = vmax.f32 %v469_v14, 0.0  ;;  %v472_v19 = vadd.f32 %v1980_v6, %v402_v15  ;;  %v397_v20 = vadd.f32 %v396_v17, %v199_v11  ;;  %v209_v21 = vpop.f32.mrf.mxu0 }
  0xcf   :  { %v1527_v23 = vpop.f32.mrf.mxu1 }
  0xd0   :  { %v471_v24 = vadd.f32 %v1980_v6, %v397_v20  ;;  %v412_v25 = vadd.f32 %v1527_v23, %v1499_v16  ;;  %1575 = vmatprep.mubr.f32.mxu0 %v485_v18  ;;  %v1502_v26 = vpop.f32.mrf.mxu0  ;;  %v488_v27 = vmax.f32 %v472_v19, 0.0  ;;  %v928_v23 = vld [vmem:[%s2466_s6] sm:$0xff] }
  0xd1   :  { %v406_v28 = vpop.f32.mrf.mxu1  ;;  %1576 = vmatmul.mubr.f32.vlgmr.msra.gmra.mxu0 %v486_v22  ;;  %v930_v22 = vld [vmem:[%s2466_s6 + $0x10] sm:$0xff] }
  0xd2   :  { %v487_v29 = vmax.f32 %v471_v24, 0.0  ;;  %v474_v30 = vadd.f32 %v1980_v6, %v412_v25  ;;  %v407_v31 = vadd.f32 %v406_v28, %v209_v21  ;;  %v219_v32 = vpop.f32.mrf.mxu0  ;;  %v931_v21 = vld [vmem:[%s2466_s6 + $0x18] sm:$0xff]  ;;  %v666_v24 = vlaneseq }
  0xd3   :  { %v1530_v33 = vpop.f32.mrf.mxu1  ;;  %1599 = vmatprep.subr.mxu1 %v931_v21 }
  0xd4   :  { %v473_v34 = vadd.f32 %v1980_v6, %v407_v31  ;;  %v422_v35 = vadd.f32 %v1530_v33, %v1502_v26  ;;  %1578 = vmatprep.mubr.f32.mxu0 %v487_v29  ;;  %v1505_v36 = vpop.f32.mrf.mxu0  ;;  %v490_v37 = vmax.f32 %v474_v30, 0.0  ;;  %1600 = vmatpush3.msra.mxu1 %v931_v21  ;;  %v2010_v25 = vand.u32 127, %v666_v24  ;;  %v2017_v26 = vld [vmem:[%s2467_s7 + $0x1] ss:$0 sm:$0xff]  ;;  %v2032_v33 = vpop.permute.xlu1 %788 }
  0xd5   :  { %v416_v38 = vpop.f32.mrf.mxu1  ;;  %1579 = vmatmul.mubr.f32.gmra.mxu0 %v488_v27  ;;  %1601 = vmatprep.subr.mxu1 %v930_v22 }
  0xd6   :  { %v489_v39 = vmax.f32 %v473_v34, 0.0  ;;  %v476_v40 = vadd.f32 %v1980_v6, %v422_v35  ;;  %v417_v41 = vadd.f32 %v416_v38, %v219_v32  ;;  %v229_v42 = vpop.f32.mrf.mxu0  ;;  %1602 = vmatpush3.msra.mxu1 %v930_v22  ;;  %vm669_vm3 = vcmp.ge.s32.totalorder %v2010_v25, 32 }
  0xd7   :  { %v1533_v43 = vpop.f32.mrf.mxu1  ;;  %vm670_vm4 = vcmp.lt.s32.totalorder %v2010_v25, 64  ;;  %vm668_vm7 = vcmp.lt.s32.totalorder %v2010_v25, 32  ;;  %vm1218_vm8 = vcmp.eq.s32.totalorder %v2010_v25, 64 }
  0xd8   :  { %v475_v44 = vadd.f32 %v1980_v6, %v417_v41  ;;  %v432_v45 = vadd.f32 %v1533_v43, %v1505_v36  ;;  %1581 = vmatprep.mubr.f32.mxu0 %v489_v39  ;;  %v1508_v46 = vpop.f32.mrf.mxu0  ;;  %v492_v47 = vmax.f32 %v476_v40, 0.0  ;;  %vm2019_vm5 = vmand %vm669_vm3, %vm670_vm4 }
  0xd9   :  { %v426_v48 = vpop.f32.mrf.mxu1  ;;  %1582 = vmatmul.mubr.f32.gmra.mxu0 %v490_v37 }
  0xda   :  { %v491_v49 = vmax.f32 %v475_v44, 0.0  ;;  %v478_v50 = vadd.f32 %v1980_v6, %v432_v45  ;;  %v427_v51 = vadd.f32 %v426_v48, %v229_v42  ;;  %v239_v52 = vpop.f32.mrf.mxu0  ;;  %v785_v42 = vpop.permute.xlu0 %784 }
  0xdb   :  { %v1536_v53 = vpop.f32.mrf.mxu1 }
  0xdc   :  { %v477_v54 = vadd.f32 %v1980_v6, %v427_v51  ;;  %v442_v55 = vadd.f32 %v1536_v53, %v1508_v46  ;;  %1584 = vmatprep.mubr.f32.mxu0 %v491_v49  ;;  %v1511_v56 = vpop.f32.mrf.mxu0  ;;  %v494_v57 = vmax.f32 %v478_v50, 0.0 }
  0xdd   :  { %v436_v58 = vpop.f32.mrf.mxu1  ;;  %1585 = vmatmul.mubr.f32.gmra.mxu0 %v492_v47  ;;  %v791_v47 = vpop.permute.xlu1 %790 }
  0xde   :  { %v493_v59 = vmax.f32 %v477_v54, 0.0  ;;  %v480_v60 = vadd.f32 %v1980_v6, %v442_v55  ;;  %v437_v61 = vadd.f32 %v436_v58, %v239_v52  ;;  %v249_v62 = vpop.f32.mrf.mxu0 }
  0xdf   :  { %v1539_v63 = vpop.f32.mrf.mxu1 }
  0xe0   :  { %v479_v0 = vadd.f32 %v1980_v6, %v437_v61  ;;  %v452_v1 = vadd.f32 %v1539_v63, %v1511_v56  ;;  %1587 = vmatprep.mubr.f32.mxu0 %v493_v59  ;;  %v1514_v2 = vpop.f32.mrf.mxu0  ;;  %v496_v3 = vmax.f32 %v480_v60, 0.0  ;;  %v787_v56 = vpop.permute.xlu0 %786 }
  0xe1   :  { %v446_v4 = vpop.f32.mrf.mxu1  ;;  %1588 = vmatmul.mubr.f32.gmra.mxu0 %v494_v57  ;;  %v795_v61 = vpop.permute.xlu1 %794 }
  0xe2   :  { %v495_v5 = vmax.f32 %v479_v0, 0.0  ;;  %v482_v7 = vadd.f32 %v1980_v6, %v452_v1  ;;  %v447_v8 = vadd.f32 %v446_v4, %v249_v62  ;;  %v259_v10 = vpop.f32.mrf.mxu0 }
  0xe3   :  { %v1542_v9 = vpop.f32.mrf.mxu1 }
  0xe4   :  { %v481_v11 = vadd.f32 %v1980_v6, %v447_v8  ;;  %v462_v12 = vadd.f32 %v1542_v9, %v1514_v2  ;;  %1590 = vmatprep.mubr.f32.mxu0 %v495_v5  ;;  %v498_v13 = vmax.f32 %v482_v7, 0.0  ;;  %v793_v2 = vpop.permute.xlu0 %792 }
  0xe5   :  { %v456_v14 = vpop.f32.mrf.mxu1  ;;  %1591 = vmatmul.mubr.f32.gmra.mxu0 %v496_v3 }
  0xe6   :  { %v497_v15 = vmax.f32 %v481_v11, 0.0  ;;  %v484_v16 = vadd.f32 %v1980_v6, %v462_v12  ;;  %v457_v17 = vadd.f32 %v456_v14, %v259_v10 }
  0xe8   :  { %v483_v18 = vadd.f32 %v1980_v6, %v457_v17  ;;  %1593 = vmatprep.mubr.f32.mxu0 %v497_v15  ;;  %v500_v19 = vmax.f32 %v484_v16, 0.0  ;;  %v929_v6 = vld [vmem:[%s2466_s6 + $0x8] sm:$0xff]  ;;  %v799_v16 = vpop.permute.xlu1 %798  ;;  %s1694_s6 = smov 96  }
  0xe9   :  { %1594 = vmatmul.mubr.f32.gmra.mxu0 %v498_v13  ;;  %1603 = vmatprep.subr.mxu1 %v929_v6 }
  0xea   :  { %v499_v20 = vmax.f32 %v483_v18, 0.0  ;;  %1604 = vmatpush3.msra.mxu1 %v929_v6 }
  0xeb   :  { %1605 = vmatprep.subr.mxu1 %v928_v23 }
  0xec   :  { %1596 = vmatprep.mubr.f32.mxu0 %v499_v20  ;;  %1606 = vmatpush3.msra.mxu1 %v928_v23  ;;  %v797_v23 = vpop.permute.xlu0 %796 }
  0xed   :  { %1597 = vmatmul.mubr.f32.gmra.mxu0 %v500_v19 }
 0x191   :  { %v1577_v27 = vpop.f32.mrf.mxu0 }
 0x192   :  { %v2024_v29 = vadd.f32 %v1577_v27, %v2017_v26 }
 0x193   :  { %v587_v30 = vpop.f32.mrf.mxu0 }
 0x194   :  { %v673_v31 = vsel %vm2019_vm5, %v2024_v29, 0.0  ;;  %v2030_v32 = vadd.f32 %v2017_v26, %v587_v30 }
 0x195   :  { %v690_v34 = vmul.f32 1.442695, %v673_v31  ;;  %v1580_v35 = vpop.f32.mrf.mxu0 }
 0x196   :  { %v672_v36 = vsel %vm2019_vm5, %v2030_v32, 0.0  ;;  %v2038_v37 = vadd.f32 %v1580_v35, %v2017_v26 }
 0x197   :  { %1639 = vpow2.f32 %v690_v34  ;;  %v688_v38 = vmul.f32 1.442695, %v672_v36  ;;  %v597_v39 = vpop.f32.mrf.mxu0 }
 0x198   :  { %v675_v40 = vsel %vm2019_vm5, %v2038_v37, 0.0  ;;  %v2044_v41 = vadd.f32 %v2017_v26, %v597_v39 }
 0x199   :  { %1641 = vpow2.f32 %v688_v38  ;;  %v694_v43 = vmul.f32 1.442695, %v675_v40  ;;  %v1583_v44 = vpop.f32.mrf.mxu0 }
 0x19a   :  { %v674_v45 = vsel %vm2019_vm5, %v2044_v41, 0.0  ;;  %v2050_v46 = vadd.f32 %v1583_v44, %v2017_v26 }
 0x19b   :  { %1643 = vpow2.f32 %v694_v43  ;;  %v692_v48 = vmul.f32 1.442695, %v674_v45  ;;  %v607_v49 = vpop.f32.mrf.mxu0 }
 0x19c   :  { %v677_v50 = vsel %vm2019_vm5, %v2050_v46, 0.0  ;;  %v2056_v51 = vadd.f32 %v2017_v26, %v607_v49 }
 0x19d   :  { %1645 = vpow2.f32 %v692_v48  ;;  %v698_v52 = vmul.f32 1.442695, %v677_v50  ;;  %v1586_v53 = vpop.f32.mrf.mxu0 }
 0x19e   :  { %v676_v54 = vsel %vm2019_vm5, %v2056_v51, 0.0  ;;  %v2062_v55 = vadd.f32 %v1586_v53, %v2017_v26 }
 0x19f   :  { %1647 = vpow2.f32 %v698_v52  ;;  %v696_v57 = vmul.f32 1.442695, %v676_v54  ;;  %v617_v58 = vpop.f32.mrf.mxu0 }
 0x1a0   :  { %v679_v59 = vsel %vm2019_vm5, %v2062_v55, 0.0  ;;  %v2068_v60 = vadd.f32 %v2017_v26, %v617_v58 }
 0x1a1   :  { %1649 = vpow2.f32 %v696_v57  ;;  %v702_v62 = vmul.f32 1.442695, %v679_v59  ;;  %v1589_v63 = vpop.f32.mrf.mxu0 }
 0x1a2   :  { %v678_v0 = vsel %vm2019_vm5, %v2068_v60, 0.0  ;;  %v2074_v1 = vadd.f32 %v1589_v63, %v2017_v26 }
 0x1a3   :  { %1651 = vpow2.f32 %v702_v62  ;;  %v700_v3 = vmul.f32 1.442695, %v678_v0  ;;  %v627_v4 = vpop.f32.mrf.mxu0 }
 0x1a4   :  { %v2076_v5 = vpop.eup %1639  ;;  %v681_v7 = vsel %vm2019_vm5, %v2074_v1, 0.0  ;;  %v2082_v8 = vadd.f32 %v2017_v26, %v627_v4 }
 0x1a5   :  { %1653 = vpow2.f32 %v700_v3  ;;  %v706_v9 = vmul.f32 1.442695, %v681_v7  ;;  %v833_v10 = vmul.f32 %v2076_v5, %v787_v56  ;;  %v1592_v11 = vpop.f32.mrf.mxu0  ;;  %v721_v12 = vsel %vm2019_vm5, %v2076_v5, 0.0  ;;  %v801_v56 = vpop.permute.xlu0 %800 }
 0x1a6   :  { %v2088_v13 = vpop.eup %1641  ;;  %v680_v14 = vsel %vm2019_vm5, %v2082_v8, 0.0  ;;  %v2094_v15 = vadd.f32 %v1592_v11, %v2017_v26 }
 0x1a7   :  { %v832_v17 = vmul.f32 %v2088_v13, %v785_v42  ;;  %1655 = vpow2.f32 %v706_v9  ;;  %v704_v18 = vmul.f32 1.442695, %v680_v14  ;;  %866 = vrot.lane.b32.xlu1 %v833_v10, %s1694_s6  ;;  %v637_v19 = vpop.f32.mrf.mxu0  ;;  %v720_v20 = vsel %vm2019_vm5, %v2088_v13, 0.0 }
 0x1a8   :  { %v2101_v21 = vpop.eup %1643  ;;  %v683_v22 = vsel %vm2019_vm5, %v2094_v15, 0.0  ;;  %v2107_v6 = vadd.f32 %v2017_v26, %v637_v19 }
 0x1a9   :  { %1657 = vpow2.f32 %v704_v18  ;;  %v710_v24 = vmul.f32 1.442695, %v683_v22  ;;  %v835_v27 = vmul.f32 %v2101_v21, %v791_v47  ;;  %v1595_v30 = vpop.f32.mrf.mxu0  ;;  %864 = vrot.lane.b32.xlu0 %v832_v17, %s1694_s6  ;;  %v723_v31 = vsel %vm2019_vm5, %v2101_v21, 0.0  ;;  %v803_v47 = vpop.permute.xlu1 %802 }
 0x1aa   :  { %v2114_v34 = vpop.eup %1645  ;;  %v682_v35 = vsel %vm2019_vm5, %v2107_v6, 0.0  ;;  %v2120_v36 = vadd.f32 %v1595_v30, %v2017_v26  ;;  %v805_v17 = vpop.permute.xlu0 %804 }
 0x1ab   :  { %v834_v38 = vmul.f32 %v2114_v34, %v2032_v33  ;;  %1659 = vpow2.f32 %v710_v24  ;;  %v708_v39 = vmul.f32 1.442695, %v682_v35  ;;  %870 = vrot.lane.b32.xlu1 %v835_v27, %s1694_s6  ;;  %v647_v40 = vpop.f32.mrf.mxu0  ;;  %v722_v42 = vsel %vm2019_vm5, %v2114_v34, 0.0 }
 0x1ac   :  { %v2128_v43 = vpop.eup %1647  ;;  %v685_v44 = vsel %vm2019_vm5, %v2120_v36, 0.0  ;;  %v2134_v45 = vadd.f32 %v2017_v26, %v647_v40 }
 0x1ad   :  { %1661 = vpow2.f32 %v708_v39  ;;  %v714_v33 = vmul.f32 1.442695, %v685_v44  ;;  %v837_v48 = vmul.f32 %v2128_v43, %v795_v61  ;;  %v1598_v49 = vpop.f32.mrf.mxu0  ;;  %868 = vrot.lane.b32.xlu0 %v834_v38, %s1694_s6  ;;  %v725_v50 = vsel %vm2019_vm5, %v2128_v43, 0.0  ;;  %v807_v10 = vpop.permute.xlu1 %806 }
 0x1ae   :  { %v2141_v52 = vpop.eup %1649  ;;  %v684_v53 = vsel %vm2019_vm5, %v2134_v45, 0.0  ;;  %v2147_v54 = vadd.f32 %v1598_v49, %v2017_v26  ;;  %v809_v40 = vpop.permute.xlu0 %808 }
 0x1af   :  { %1663 = vpow2.f32 %v714_v33  ;;  %v712_v57 = vmul.f32 1.442695, %v684_v53  ;;  %v836_v58 = vmul.f32 %v2141_v52, %v793_v2  ;;  %874 = vrot.lane.b32.xlu1 %v837_v48, %s1694_s6  ;;  %v657_v59 = vpop.f32.mrf.mxu0  ;;  %v724_v61 = vsel %vm2019_vm5, %v2141_v52, 0.0 }
 0x1b0   :  { %v2154_v62 = vpop.eup %1651  ;;  %v687_v63 = vsel %vm2019_vm5, %v2147_v54, 0.0  ;;  %v2160_v0 = vadd.f32 %v2017_v26, %v657_v59 }
 0x1b1   :  { %1665 = vpow2.f32 %v712_v57  ;;  %v718_v3 = vmul.f32 1.442695, %v687_v63  ;;  %v839_v2 = vmul.f32 %v2154_v62, %v799_v16  ;;  %872 = vrot.lane.b32.xlu0 %v836_v58, %s1694_s6  ;;  %v727_v4 = vsel %vm2019_vm5, %v2154_v62, 0.0  ;;  %v811_v30 = vpop.permute.xlu1 %810 }
 0x1b2   :  { %v2167_v7 = vpop.eup %1653  ;;  %v686_v9 = vsel %vm2019_vm5, %v2160_v0, 0.0  ;;  %v813_v63 = vpop.permute.xlu0 %812 }
 0x1b3   :  { %1667 = vpow2.f32 %v718_v3  ;;  %v716_v26 = vmul.f32 1.442695, %v686_v9  ;;  %v838_v11 = vmul.f32 %v2167_v7, %v797_v23  ;;  %878 = vrot.lane.b32.xlu1 %v839_v2, %s1694_s6  ;;  %v726_v14 = vsel %vm2019_vm5, %v2167_v7, 0.0 }
 0x1b4   :  { %v2177_v16 = vpop.eup %1655 }
 0x1b5   :  { %1669 = vpow2.f32 %v716_v26  ;;  %v841_v18 = vmul.f32 %v2177_v16, %v803_v47  ;;  %876 = vrot.lane.b32.xlu0 %v838_v11, %s1694_s6  ;;  %v729_v19 = vsel %vm2019_vm5, %v2177_v16, 0.0 }
 0x1b6   :  { %v2184_v22 = vpop.eup %1657 }
 0x1b7   :  { %v840_v23 = vmul.f32 %v2184_v22, %v801_v56  ;;  %882 = vrot.lane.b32.xlu1 %v841_v18, %s1694_s6  ;;  %v815_v56 = vpop.permute.xlu1 %814 }
 0x1b8   :  { %v2191_v27 = vpop.eup %1659 }
 0x1b9   :  { %v843_v35 = vmul.f32 %v2191_v27, %v807_v10  ;;  %880 = vrot.lane.b32.xlu0 %v840_v23, %s1694_s6 }
 0x1ba   :  { %v2198_v39 = vpop.eup %1661 }
 0x1bb   :  { %v842_v44 = vmul.f32 %v2198_v39, %v805_v17  ;;  %886 = vrot.lane.b32.xlu1 %v843_v35, %s1694_s6  ;;  %v730_v47 = vsel %vm2019_vm5, %v2198_v39, 0.0 }
 0x1bc   :  { %v2205_v33 = vpop.eup %1663 }
 0x1bd   :  { %v845_v48 = vmul.f32 %v2205_v33, %v811_v30  ;;  %884 = vrot.lane.b32.xlu0 %v842_v44, %s1694_s6 }
 0x1be   :  { %v2212_v53 = vpop.eup %1665 }
 0x1bf   :  { %v844_v57 = vmul.f32 %v2212_v53, %v809_v40  ;;  %890 = vrot.lane.b32.xlu1 %v845_v48, %s1694_s6  ;;  %v732_v58 = vsel %vm2019_vm5, %v2212_v53, 0.0 }
 0x1c0   :  { %v2219_v59 = vpop.eup %1667 }
 0x1c1   :  { %v847_v3 = vmul.f32 %v2219_v59, %v815_v56  ;;  %888 = vrot.lane.b32.xlu0 %v844_v57, %s1694_s6 }
 0x1c2   :  { %v2226_v9 = vpop.eup %1669 }
 0x1c3   :  { %v846_v10 = vmul.f32 %v2226_v9, %v813_v63  ;;  %894 = vrot.lane.b32.xlu1 %v847_v3, %s1694_s6 }
 0x1c5   :  { %892 = vrot.lane.b32.xlu0 %v846_v10, %s1694_s6 }
 0x219   :  { %v867_v11 = vpop.permute.xlu1 %866 }
 0x21a   :  { %v913_v23 = vadd.f32 %v867_v11, %v2024_v29 }
 0x21b   :  { %v865_v17 = vpop.permute.xlu0 %864 }
 0x21c   :  { %v912_v18 = vadd.f32 %v865_v17, %v2030_v32 }
 0x21d   :  { %v871_v30 = vpop.permute.xlu1 %870 }
 0x21e   :  { %1607 = vmatprep.mubr.msk.f32.mxu1 %vm936_vm6, %v912_v18  ;;  %v915_v44 = vadd.f32 %v871_v30, %v2038_v37 }
 0x21f   :  { %1608 = vmatmul.mubr.msk.f32.vlgmr.msra.gmra.mxu1 %vm936_vm6, %v913_v23  ;;  %v869_v35 = vpop.permute.xlu0 %868 }
 0x220   :  { %v914_v40 = vadd.f32 %v869_v35, %v2044_v41 }
 0x221   :  { %v875_v48 = vpop.permute.xlu1 %874 }
 0x222   :  { %1610 = vmatprep.mubr.msk.f32.mxu1 %vm936_vm6, %v914_v40  ;;  %v917_v63 = vadd.f32 %v875_v48, %v2050_v46 }
 0x223   :  { %1611 = vmatmul.mubr.msk.f32.gmra.mxu1 %vm936_vm6, %v915_v44  ;;  %v873_v56 = vpop.permute.xlu0 %872 }
 0x224   :  { %v916_v57 = vadd.f32 %v873_v56, %v2056_v51 }
 0x225   :  { %v879_v3 = vpop.permute.xlu1 %878 }
 0x226   :  { %1613 = vmatprep.mubr.msk.f32.mxu1 %vm936_vm6, %v916_v57  ;;  %v919_v17 = vadd.f32 %v879_v3, %v2062_v55 }
 0x227   :  { %1614 = vmatmul.mubr.msk.f32.gmra.mxu1 %vm936_vm6, %v917_v63  ;;  %v877_v10 = vpop.permute.xlu0 %876 }
 0x228   :  { %v918_v11 = vadd.f32 %v877_v10, %v2068_v60 }
 0x229   :  { %v883_v18 = vpop.permute.xlu1 %882 }
 0x22a   :  { %1616 = vmatprep.mubr.msk.f32.mxu1 %vm936_vm6, %v918_v11  ;;  %v921_v35 = vadd.f32 %v883_v18, %v2074_v1 }
 0x22b   :  { %1617 = vmatmul.mubr.msk.f32.gmra.mxu1 %vm936_vm6, %v919_v17  ;;  %v881_v23 = vpop.permute.xlu0 %880 }
 0x22c   :  { %v920_v30 = vadd.f32 %v881_v23, %v2082_v8 }
 0x22d   :  { %v887_v40 = vpop.permute.xlu1 %886 }
 0x22e   :  { %1619 = vmatprep.mubr.msk.f32.mxu1 %vm936_vm6, %v920_v30  ;;  %v923_v56 = vadd.f32 %v887_v40, %v2094_v15  ;;  %v2269_v30 = vld [vmem:[%s2467_s7 + $0x2] ss:$0 sm:$0xff] }
 0x22f   :  { %1620 = vmatmul.mubr.msk.f32.gmra.mxu1 %vm936_vm6, %v921_v35  ;;  %v885_v44 = vpop.permute.xlu0 %884 }
 0x230   :  { %v922_v48 = vadd.f32 %v885_v44, %v2107_v6 }
 0x231   :  { %v891_v57 = vpop.permute.xlu1 %890 }
 0x232   :  { %1622 = vmatprep.mubr.msk.f32.mxu1 %vm936_vm6, %v922_v48  ;;  %v925_v10 = vadd.f32 %v891_v57, %v2120_v36  ;;  %v2275_v48 = vld [vmem:[%s2467_s7 + $0x3] ss:$0 sm:$0xff] }
 0x233   :  { %1623 = vmatmul.mubr.msk.f32.gmra.mxu1 %vm936_vm6, %v923_v56  ;;  %v889_v63 = vpop.permute.xlu0 %888 }
 0x234   :  { %v924_v3 = vadd.f32 %v889_v63, %v2134_v45 }
 0x235   :  { %v895_v11 = vpop.permute.xlu1 %894 }
 0x236   :  { %1625 = vmatprep.mubr.msk.f32.mxu1 %vm936_vm6, %v924_v3  ;;  %v927_v23 = vadd.f32 %v895_v11, %v2147_v54 }
 0x237   :  { %1626 = vmatmul.mubr.msk.f32.gmra.mxu1 %vm936_vm6, %v925_v10  ;;  %v893_v17 = vpop.permute.xlu0 %892 }
 0x238   :  { %v926_v18 = vadd.f32 %v893_v17, %v2160_v0 }
 0x23a   :  { %1628 = vmatprep.mubr.msk.f32.mxu1 %vm936_vm6, %v926_v18 }
 0x23b   :  { %1629 = vmatmul.mubr.msk.f32.gmra.mxu1 %vm936_vm6, %v927_v23 }
 0x2df   :  { %v1609_v35 = vpop.f32.mrf.mxu1 }
 0x2e0   :  { %v1057_v40 = vadd.f32 %v1609_v35, %v2269_v30 }
 0x2e1   :  { %v1051_v44 = vpop.f32.mrf.mxu1 }
 0x2e2   :  { %v1131_v56 = vmax.f32 %v1057_v40, 0.0  ;;  %v1052_v57 = vadd.f32 %v2269_v30, %v1051_v44 }
 0x2e3   :  { %v1612_v63 = vpop.f32.mrf.mxu1 }
 0x2e4   :  { %v1130_v3 = vmax.f32 %v1052_v57, 0.0  ;;  %v1067_v10 = vadd.f32 %v1612_v63, %v2269_v30  ;;  %v1151_v11 = vmul.f32 %v2275_v48, %v1131_v56 }
 0x2e5   :  { %v1061_v17 = vpop.f32.mrf.mxu1 }
 0x2e6   :  { %v1133_v18 = vmax.f32 %v1067_v10, 0.0  ;;  %v1062_v23 = vadd.f32 %v2269_v30, %v1061_v17  ;;  %1168 = vadd.xlane.f32.xlu1 %v1151_v11  ;;  %v1150_v35 = vmul.f32 %v2275_v48, %v1130_v3 }
 0x2e7   :  { %v1615_v2 = vpop.f32.mrf.mxu1 }
 0x2e8   :  { %1166 = vadd.xlane.f32.xlu0 %v1150_v35  ;;  %v1077_v49 = vadd.f32 %v1615_v2, %v2269_v30  ;;  %v1132_v38 = vmax.f32 %v1062_v23, 0.0  ;;  %v1153_v57 = vmul.f32 %v2275_v48, %v1133_v18 }
 0x2e9   :  { %v1071_v40 = vpop.f32.mrf.mxu1 }
 0x2ea   :  { %v1072_v44 = vadd.f32 %v2269_v30, %v1071_v40  ;;  %v1135_v56 = vmax.f32 %v1077_v49, 0.0  ;;  %v1152_v3 = vmul.f32 %v2275_v48, %v1132_v38  ;;  %v1695_v40 = vmov 0  }
 0x2eb   :  { %v1618_v63 = vpop.f32.mrf.mxu1  ;;  %1637 = vset.pattern.permute.xlu0 %v1695_v40  ;;  %1638 = vset.pattern.permute.xlu1 %v1695_v40 }
 0x2ec   :  { %v1134_v24 = vmax.f32 %v1072_v44, 0.0  ;;  %1172 = vadd.xlane.f32.xlu0 %v1153_v57  ;;  %v1087_v17 = vadd.f32 %v1618_v63, %v2269_v30  ;;  %v1155_v18 = vmul.f32 %v2275_v48, %v1135_v56 }
 0x2ed   :  { %v1081_v10 = vpop.f32.mrf.mxu1 }
 0x2ee   :  { %v1082_v11 = vadd.f32 %v2269_v30, %v1081_v10  ;;  %v1154_v35 = vmul.f32 %v2275_v48, %v1134_v24  ;;  %v1137_v49 = vmax.f32 %v1087_v17, 0.0 }
 0x2ef   :  { %v1621_v2 = vpop.f32.mrf.mxu1 }
 0x2f0   :  { %v1136_v26 = vmax.f32 %v1082_v11, 0.0  ;;  %1170 = vadd.xlane.f32.xlu0 %v1152_v3  ;;  %1174 = vadd.xlane.f32.xlu1 %v1154_v35  ;;  %v1097_v44 = vadd.f32 %v1621_v2, %v2269_v30  ;;  %v1157_v35 = vmul.f32 %v2275_v48, %v1137_v49 }
 0x2f1   :  { %v1091_v23 = vpop.f32.mrf.mxu1 }
 0x2f2   :  { %v1092_v57 = vadd.f32 %v2269_v30, %v1091_v23  ;;  %v1156_v63 = vmul.f32 %v2275_v48, %v1136_v26  ;;  %v1139_v3 = vmax.f32 %v1097_v44, 0.0 }
 0x2f3   :  { %v1624_v38 = vpop.f32.mrf.mxu1 }
 0x2f4   :  { %v1138_v10 = vmax.f32 %v1092_v57, 0.0  ;;  %1176 = vadd.xlane.f32.xlu0 %v1155_v18  ;;  %1178 = vadd.xlane.f32.xlu1 %v1156_v63  ;;  %v1107_v24 = vadd.f32 %v1624_v38, %v2269_v30  ;;  %v1159_v63 = vmul.f32 %v2275_v48, %v1139_v3 }
 0x2f5   :  { %v1101_v11 = vpop.f32.mrf.mxu1 }
 0x2f6   :  { %v1102_v56 = vadd.f32 %v2269_v30, %v1101_v11  ;;  %v1158_v17 = vmul.f32 %v2275_v48, %v1138_v10  ;;  %v1141_v23 = vmax.f32 %v1107_v24, 0.0 }
 0x2f7   :  { %v1627_v40 = vpop.f32.mrf.mxu1 }
 0x2f8   :  { %v1140_v2 = vmax.f32 %v1102_v56, 0.0  ;;  %1180 = vadd.xlane.f32.xlu0 %v1157_v35  ;;  %1182 = vadd.xlane.f32.xlu1 %v1158_v17  ;;  %v1117_v57 = vadd.f32 %v1627_v40, %v2269_v30  ;;  %v1161_v10 = vmul.f32 %v2275_v48, %v1141_v23  ;;  %v1401_v23 = vld [vmem:[%s2467_s7 + $0x4] ss:$0 sm:$0xff]  ;;  %s1696_s7 = smov [#allocation2]  }
 0x2f9   :  { %v1111_v26 = vpop.f32.mrf.mxu1  ;;  %s1336_s27 = sshll.u32 %s1696_s7, 4  ;;  %s1337_s27 = int_to_ptr.vmem [resolvable:$true] %s1336_s27 }
 0x2fa   :  { %v1112_v18 = vadd.f32 %v2269_v30, %v1111_v26  ;;  %v1160_v44 = vmul.f32 %v2275_v48, %v1140_v2  ;;  %v1143_v56 = vmax.f32 %v1117_v57, 0.0  ;;  %s1671_s28 = scalar_lea.vmem %s1337_s27, 2048  ;;  %p1676_p1 = scmp.lt.s32.totalorder %s1337_s27, %s1337_s27 }
 0x2fb   :  { %v1630_v38 = vpop.f32.mrf.mxu1  ;;  %p1672_p0 = scmp.ne.s32.totalorder %s1337_s27, %s1671_s28  ;;  %p1677_p2 = scmp.lt.s32.totalorder %s1671_s28, %s1671_s28 }
 0x2fc   :  { %v1142_v11 = vmax.f32 %v1112_v18, 0.0  ;;  %1184 = vadd.xlane.f32.xlu0 %v1159_v63  ;;  %1186 = vadd.xlane.f32.xlu1 %v1160_v44  ;;  %v1127_v35 = vadd.f32 %v1630_v38, %v2269_v30  ;;  %v1163_v2 = vmul.f32 %v2275_v48, %v1143_v56 }
 0x2fd   :  { %v1121_v49 = vpop.f32.mrf.mxu1  ;;  %p1678_p3 = por %p1677_p2, %p1676_p1 }
 0x2fe   :  { %v1122_v24 = vadd.f32 %v2269_v30, %v1121_v49  ;;  %v1162_v17 = vmul.f32 %v2275_v48, %v1142_v11  ;;  %v1145_v3 = vmax.f32 %v1127_v35, 0.0 }
 0x2ff   :  { %p1679_p4 = pnand %p1678_p3, %p1672_p0 }
 0x300   :  { %v1144_v40 = vmax.f32 %v1122_v24, 0.0  ;;  %1188 = vadd.xlane.f32.xlu0 %v1161_v10  ;;  %1190 = vadd.xlane.f32.xlu1 %v1162_v17  ;;  %v1165_v18 = vmul.f32 %v2275_v48, %v1145_v3 }
 0x302   :  { %v1164_v26 = vmul.f32 %v2275_v48, %v1144_v40 }
 0x304   :  { %1192 = vadd.xlane.f32.xlu0 %v1163_v2  ;;  %1194 = vadd.xlane.f32.xlu1 %v1164_v26 }
 0x308   :  { %1196 = vadd.xlane.f32.xlu0 %v1165_v18 }
 0x36f   :  { %v1169_v30 = vpop.xlane.xlu1 %1168 }
 0x370   :  { %v1203_v57 = vadd.f32 %v1401_v23, %v1169_v30 }
 0x371   :  { %v1167_v63 = vpop.xlane.xlu0 %1166 }
 0x372   :  { %v1202_v44 = vadd.f32 %v1401_v23, %v1167_v63  ;;  %1226 = vperm.xlu0 %1637, %v1203_v57  }
 0x374   :  { %1221 = vperm.xlu1 %1638, %v1202_v44  }
 0x375   :  { %v1173_v38 = vpop.xlane.xlu0 %1172 }
 0x376   :  { %v1205_v11 = vadd.f32 %v1401_v23, %v1173_v38 }
 0x378   :  { %1236 = vperm.xlu1 %1638, %v1205_v11  }
 0x379   :  { %v1175_v49 = vpop.xlane.xlu1 %1174  ;;  %v1171_v10 = vpop.xlane.xlu0 %1170 }
 0x37a   :  { %v1204_v56 = vadd.f32 %v1401_v23, %v1171_v10  ;;  %v1206_v40 = vadd.f32 %v1401_v23, %v1175_v49 }
 0x37c   :  { %1231 = vperm.xlu1 %1638, %v1204_v56  }
 0x37d   :  { %v1179_v35 = vpop.xlane.xlu1 %1178  ;;  %v1177_v48 = vpop.xlane.xlu0 %1176 }
 0x37e   :  { %v1207_v24 = vadd.f32 %v1401_v23, %v1177_v48  ;;  %v1208_v63 = vadd.f32 %v1401_v23, %v1179_v35  ;;  %v737_v35 = vsel %vm668_vm7, %v2024_v29, %v721_v12  ;;  %v739_v29 = vsel %vm668_vm7, %v2038_v37, %v723_v31 }
 0x37f   :  { %v741_v37 = vsel %vm668_vm7, %v2050_v46, %v725_v50  ;;  %v743_v46 = vsel %vm668_vm7, %v2062_v55, %v727_v4  ;;  %v742_v55 = vsel %vm668_vm7, %v2068_v60, %v726_v14  ;;  %v745_v60 = vsel %vm668_vm7, %v2074_v1, %v729_v19 }
 0x380   :  { %1246 = vperm.xlu1 %1638, %v1207_v24   ;;  %v2472_v1 = vsel %vm2019_vm5, %v2184_v22, 0.0 }
 0x381   :  { %v1183_v17 = vpop.xlane.xlu1 %1182  ;;  %v1181_v3 = vpop.xlane.xlu0 %1180  ;;  %v744_v19 = vsel %vm668_vm7, %v2082_v8, %v2472_v1  ;;  %v2474_v8 = vsel %vm2019_vm5, %v2205_v33, 0.0 }
 0x382   :  { %v1209_v26 = vadd.f32 %v1401_v23, %v1181_v3  ;;  %v1210_v49 = vadd.f32 %v1401_v23, %v1183_v17 }
 0x384   :  { %1241 = vperm.xlu1 %1638, %v1206_v40  }
 0x385   :  { %v1187_v2 = vpop.xlane.xlu1 %1186  ;;  %v1185_v30 = vpop.xlane.xlu0 %1184 }
 0x386   :  { %v1212_v18 = vadd.f32 %v1401_v23, %v1187_v2  ;;  %v1211_v11 = vadd.f32 %v1401_v23, %v1185_v30 }
 0x388   :  { %1271 = vperm.xlu0 %1637, %v1212_v18   ;;  %1256 = vperm.xlu1 %1638, %v1209_v26  }
 0x389   :  { %v1191_v57 = vpop.xlane.xlu1 %1190  ;;  %v1189_v56 = vpop.xlane.xlu0 %1188 }
 0x38a   :  { %v1214_v44 = vadd.f32 %v1401_v23, %v1191_v57  ;;  %v1213_v24 = vadd.f32 %v1401_v23, %v1189_v56  ;;  %v2473_v57 = vsel %vm2019_vm5, %v2191_v27, 0.0 }
 0x38c   :  { %1281 = vperm.xlu0 %1637, %v1214_v44   ;;  %1251 = vperm.xlu1 %1638, %v1208_v63   ;;  %v747_v63 = vsel %vm668_vm7, %v2094_v15, %v2473_v57  ;;  %v2475_v15 = vsel %vm2019_vm5, %v2219_v59, 0.0 }
 0x38d   :  { %v1195_v38 = vpop.xlane.xlu1 %1194  ;;  %v1193_v48 = vpop.xlane.xlu0 %1192  ;;  %v751_v33 = vsel %vm668_vm7, %v2147_v54, %v2475_v15 }
 0x38e   :  { %v1216_v10 = vadd.f32 %v1401_v23, %v1195_v38  ;;  %v1215_v40 = vadd.f32 %v1401_v23, %v1193_v48  ;;  %v749_v38 = vsel %vm668_vm7, %v2120_v36, %v2474_v8 }
 0x390   :  { %1291 = vperm.xlu0 %1637, %v1216_v10   ;;  %1266 = vperm.xlu1 %1638, %v1211_v11  }
 0x391   :  { %v1197_v3 = vpop.xlane.xlu0 %1196 }
 0x392   :  { %v1217_v2 = vadd.f32 %v1401_v23, %v1197_v3  ;;  %v736_v23 = vsel %vm668_vm7, %v2030_v32, %v720_v20  ;;  %v738_v32 = vsel %vm668_vm7, %v2044_v41, %v722_v42  ;;  %v740_v41 = vsel %vm668_vm7, %v2056_v51, %v724_v61 }
 0x393   :  { %v746_v51 = vsel %vm668_vm7, %v2107_v6, %v730_v47  ;;  %v748_v6 = vsel %vm668_vm7, %v2134_v45, %v732_v58  ;;  %v2471_v45 = vsel %vm2019_vm5, %v2226_v9, 0.0 }
 0x394   :  { %1261 = vperm.xlu1 %1638, %v1210_v49   ;;  %v750_v53 = vsel %vm668_vm7, %v2160_v0, %v2471_v45 }
 0x398   :  { %1276 = vperm.xlu1 %1638, %v1213_v24  }
 0x39c   :  { %1286 = vperm.xlu1 %1638, %v1215_v40  }
 0x3a0   :  { %1296 = vperm.xlu1 %1638, %v1217_v2  }
 0x3ed   :  { %v1227_v17 = vpop.permute.xlu0 %1226 }
 0x3ee   :  { %v1300_v26 = vsel %vm1218_vm8, %v1227_v17, %v737_v35 }
 0x3ef   :  { %1316 = vst [vmem:[#allocation2 + $0x8] sm:$0xff] %v1300_v26  ;;  %v1222_v18 = vpop.permute.xlu1 %1221 }
 0x3f0   :  { %v1299_v5 = vsel %vm1218_vm8, %v1222_v18, %v736_v23 }
 0x3f1   :  { %1315 = vst [vmem:[#allocation2] sm:$0xff] %v1299_v5 }
 0x3f3   :  { %v1237_v12 = vpop.permute.xlu1 %1236 }
 0x3f4   :  { %v1302_v13 = vsel %vm1218_vm8, %v1237_v12, %v739_v29 }
 0x3f5   :  { %1318 = vst [vmem:[#allocation2 + $0x18] sm:$0xff] %v1302_v13 }
 0x3f7   :  { %v1232_v20 = vpop.permute.xlu1 %1231 }
 0x3f8   :  { %v1301_v21 = vsel %vm1218_vm8, %v1232_v20, %v738_v32 }
 0x3f9   :  { %1317 = vst [vmem:[#allocation2 + $0x10] sm:$0xff] %v1301_v21 }
 0x3fb   :  { %v1247_v31 = vpop.permute.xlu1 %1246 }
 0x3fc   :  { %v1304_v34 = vsel %vm1218_vm8, %v1247_v31, %v741_v37 }
 0x3fd   :  { %1320 = vst [vmem:[#allocation2 + $0x28] sm:$0xff] %v1304_v34 }
 0x3ff   :  { %v1242_v42 = vpop.permute.xlu1 %1241 }
 0x400   :  { %v1303_v43 = vsel %vm1218_vm8, %v1242_v42, %v740_v41 }
 0x401   :  { %1319 = vst [vmem:[#allocation2 + $0x20] sm:$0xff] %v1303_v43 }
 0x403   :  { %v1257_v50 = vpop.permute.xlu1 %1256  ;;  %v1272_v52 = vpop.permute.xlu0 %1271 }
 0x404   :  { %v1306_v61 = vsel %vm1218_vm8, %v1257_v50, %v743_v46  ;;  %v1309_v62 = vsel %vm1218_vm8, %v1272_v52, %v746_v51 }
 0x405   :  { %1322 = vst [vmem:[#allocation2 + $0x38] sm:$0xff] %v1306_v61  ;;  %1325 = vst [vmem:[#allocation2 + $0x50] sm:$0xff] %v1309_v62 }
 0x407   :  { %v1252_v4 = vpop.permute.xlu1 %1251  ;;  %v1282_v39 = vpop.permute.xlu0 %1281 }
 0x408   :  { %v1305_v47 = vsel %vm1218_vm8, %v1252_v4, %v742_v55  ;;  %v1311_v7 = vsel %vm1218_vm8, %v1282_v39, %v748_v6 }
 0x409   :  { %1321 = vst [vmem:[#allocation2 + $0x30] sm:$0xff] %v1305_v47  ;;  %1327 = vst [vmem:[#allocation2 + $0x60] sm:$0xff] %v1311_v7 }
 0x40b   :  { %v1267_v14 = vpop.permute.xlu1 %1266  ;;  %v1292_v58 = vpop.permute.xlu0 %1291 }
 0x40c   :  { %v1308_v30 = vsel %vm1218_vm8, %v1267_v14, %v745_v60  ;;  %v1313_v16 = vsel %vm1218_vm8, %v1292_v58, %v750_v53 }
 0x40d   :  { %1324 = vst [vmem:[#allocation2 + $0x48] sm:$0xff] %v1308_v30  ;;  %1329 = vst [vmem:[#allocation2 + $0x70] sm:$0xff] %v1313_v16 }
 0x40f   :  { %v1262_v9 = vpop.permute.xlu1 %1261 }
 0x410   :  { %v1307_v0 = vsel %vm1218_vm8, %v1262_v9, %v744_v19 }
 0x411   :  { %1323 = vst [vmem:[#allocation2 + $0x40] sm:$0xff] %v1307_v0 }
 0x413   :  { %v1277_v44 = vpop.permute.xlu1 %1276 }
 0x414   :  { %v1310_v22 = vsel %vm1218_vm8, %v1277_v44, %v747_v63 }
 0x415   :  { %1326 = vst [vmem:[#allocation2 + $0x58] sm:$0xff] %v1310_v22 }
 0x417   :  { %v1287_v11 = vpop.permute.xlu1 %1286 }
 0x418   :  { %v1312_v27 = vsel %vm1218_vm8, %v1287_v11, %v749_v38 }
 0x419   :  { %1328 = vst [vmem:[#allocation2 + $0x68] sm:$0xff] %v1312_v27 }
 0x41b   :  { %v1297_v10 = vpop.permute.xlu1 %1296 }
 0x41c   :  { %v1314_v36 = vsel %vm1218_vm8, %v1297_v10, %v751_v33 }
 0x41d   :  { %1330 = vst [vmem:[#allocation2 + $0x78] sm:$0xff] %v1314_v36 }
 0x41e   :  { %1682 = shalt.err (!%p1679_p4)
}
 0x41f   :  { %s1697_s29 = smov 128   ;;  %s1698_s30 = smov 8  }
 0x420   :  { %1342 = dma.vmem_to_hbm [thread:$0]  %s1337_s27, 2048, %s2468_s8, [#allocation3], %s1697_s29, %s1697_s29, %s1698_s30  }
 0x421   :  { %1691 = dma.done.wait [#allocation3], 2048  }
 0x422   :  { %1692 = vsyncadd [#allocation3], 4294965248 }
 0x423   :  { %1346 = vsyncpa [#allocation3], 1 }

</bundles_post_ra>
